<compile_context>
chip_gen: v5e
topology: v5e:2x2
jax: 0.10.0
libtpu: 0.0.40
codegen_flags: <defaults>
</compile_context>

<pallas_src>
import functools
import math

import jax
import jax.numpy as jnp
from jax.experimental import pallas as pl
from jax.experimental.pallas import tpu as pltpu

_LANES = 128


def _cdiv(a, b):
    return -(-a // b)


def _round_up(a, m):
    return _cdiv(a, m) * m


def _lcm(a, b):
    return a * b // math.gcd(a, b)


def _sublane_multiple(dtype):
    itemsize = jnp.dtype(dtype).itemsize
    return 8 * max(1, 4 // max(1, itemsize))   # f32->8, bf16->16, int8->32


def _focal_bce_kernel(*refs, gamma, total, block_rows, needs_mask, has_pw):
    if has_pw:
        preds_ref, targs_ref, pw_ref, out_ref, acc_ref = refs
    else:
        preds_ref, targs_ref, out_ref, acc_ref = refs
        pw_ref = None

    b = pl.program_id(0)

    @pl.when(b == 0)
    def _():
        acc_ref[...] = jnp.zeros_like(acc_ref)

    x = preds_ref[...].astype(jnp.float32)      # (block_rows, 128)
    t = targs_ref[...].astype(jnp.float32)      # (block_rows, 128)

    # Stable softplus pieces (one exp + one log1p covers both signs):
    #   softplus(x)  = max(x, 0) + log1p(exp(-|x|))
    #   softplus(-x) = softplus(x) - x
    z = jnp.exp(-jnp.abs(x))
    log1p_z = jnp.log1p(z)
    sp_pos = jnp.maximum(x, 0.0) + log1p_z
    sp_neg = sp_pos - x

    one_minus_t = 1.0 - t
    if has_pw:
        pw = pw_ref[...].astype(jnp.float32)
        bce = (pw * t) * sp_neg + one_minus_t * sp_pos
    else:
        bce = t * sp_neg + one_minus_t * sp_pos

    # sigmoid(x) without a second exp:  x>=0 -> 1/(1+z) ;  x<0 -> z/(1+z)
    probs = jnp.where(x >= 0.0, 1.0, z) * pl.reciprocal(1.0 + z)
    # 1 - p_t  ==  t + probs*(1 - 2t)
    one_minus_pt = t + probs * (1.0 - 2.0 * t)

    g = float(gamma)
    if g == 0.0:
        val = bce
    else:
        if g.is_integer() and 1.0 <= g <= 8.0:
            focal = one_minus_pt
            for _ in range(int(g) - 1):          # gamma==2 -> one VPU mul, no EUP
                focal = focal * one_minus_pt
        else:
            focal = jnp.power(one_minus_pt, jnp.float32(g))
        val = focal * bce

    if needs_mask:
        # Mask the pad region and the last block's overhang (flat index >= total).
        row_iota = jax.lax.broadcasted_iota(jnp.int32, val.shape, 0)
        lane_iota = jax.lax.broadcasted_iota(jnp.int32, val.shape, 1)
        flat_idx = (b * block_rows + row_iota) * _LANES + lane_iota
        val = jnp.where(flat_idx < total, val, 0.0)

    # Fold into a fixed (8,128) accumulator: VMEM footprint flat in block_rows.
    acc_ref[...] += jnp.sum(val.reshape(-1, 8, _LANES), axis=0)

    @pl.when(b == pl.num_programs(0) - 1)
    def _():
        out_ref[0, 0] = jnp.sum(acc_ref[...])


def _reference_loss(preds, targs, pw_row, gamma):
    x = preds.astype(jnp.float32)
    t = targs.astype(jnp.float32)
    probs = jax.nn.sigmoid(x)
    p_t = probs * t + (1.0 - probs) * (1.0 - t)
    focal = jnp.power(1.0 - p_t, jnp.float32(gamma))
    w = 1.0 if pw_row is None else pw_row
    bce = w * t * jax.nn.softplus(-x) + (1.0 - t) * jax.nn.softplus(x)
    return (focal * bce).sum(-1).mean()


def binary_focal_bce_loss(preds, targs, pos_weight=None, *, gamma=2.0,
                          block_rows=2048, min_pallas_elements=32768):
    """Pallas implementation of BinaryCrossEntropyFocalLoss.forward (ignore_nans=False)."""
    N, C = preds.shape
    total = N * C

    pw_vec = None
    if pos_weight is not None:
        pw_vec = jnp.asarray(pos_weight, jnp.float32).reshape(-1)
        if pw_vec.size == 0:
            pw_vec = None

    # Tiny inputs: a fused XLA elementwise reduction beats any kernel launch.
    if total < min_pallas_elements:
        return _reference_loss(preds, targs,
                               None if pw_vec is None else pw_vec.reshape(1, C),
                               gamma)

    sub_mult = max(_sublane_multiple(preds.dtype), _sublane_multiple(targs.dtype))

    # pos_weight layout: the flattened class pattern repeats every
    # period = C / gcd(C, 128) lane-rows -> keep one resident block of it.
    if pw_vec is None:
        period = 1
        pw_mode = "none"
    else:
        period = C // math.gcd(C, _LANES)
        pw_mode = "pattern" if _lcm(period, sub_mult) <= 4096 else "full"

    row_align = _lcm(period, sub_mult) if pw_mode == "pattern" else sub_mult

    rows = _cdiv(total, _LANES)
    rows_padded = _round_up(rows, row_align)
    pad_elems = rows_padded * _LANES - total      # == 0 -> zero-copy reshape path

    # Balanced block size (multiple of row_align, <= rows_padded).
    block_rows_req = max(_round_up(block_rows, row_align), row_align)
    nblocks = max(1, _cdiv(rows_padded, block_rows_req))
    block_rows_eff = min(_round_up(_cdiv(rows_padded, nblocks), row_align), rows_padded)
    num_blocks = _cdiv(rows_padded, block_rows_eff)
    needs_mask = (pad_elems != 0) or (num_blocks * block_rows_eff != rows_padded)

    def to_2d(a):
        flat = a.reshape(-1)
        if pad_elems:
            flat = jnp.pad(flat, (0, pad_elems))   # single minimal copy; else no copy
        return flat.reshape(rows_padded, _LANES)

    inputs = [to_2d(preds), to_2d(targs)]
    data_spec = pl.BlockSpec((block_rows_eff, _LANES), lambda b: (b, 0))
    in_specs = [data_spec, data_spec]

    if pw_mode == "pattern":
        cls = jnp.arange(block_rows_eff * _LANES, dtype=jnp.int32) % C
        pw_block = pw_vec[cls].reshape(block_rows_eff, _LANES)
        inputs.append(pw_block)
        in_specs.append(pl.BlockSpec((block_rows_eff, _LANES), lambda b: (0, 0)))
    elif pw_mode == "full":
        pw_full = jnp.broadcast_to(pw_vec.reshape(1, C), (N, C))
        inputs.append(to_2d(pw_full))
        in_specs.append(data_spec)

    n_elem = rows_padded * _LANES
    cost = pl.CostEstimate(
        flops=18 * n_elem,
        transcendentals=3 * n_elem,
        bytes_accessed=sum(int(a.size) * a.dtype.itemsize for a in inputs) + 4,
    )

    kernel = functools.partial(
        _focal_bce_kernel, gamma=float(gamma), total=total,
        block_rows=block_rows_eff, needs_mask=needs_mask,
        has_pw=(pw_mode != "none"))

    out = pl.pallas_call(
        kernel,
        out_shape=jax.ShapeDtypeStruct((1, 1), jnp.float32),
        grid_spec=pltpu.PrefetchScalarGridSpec(
            num_scalar_prefetch=0,
            grid=(num_blocks,),
            in_specs=in_specs,
            out_specs=pl.BlockSpec((1, 1), lambda b: (0, 0),
                                   memory_space=pltpu.MemorySpace.SMEM),
            scratch_shapes=[pltpu.VMEM((8, _LANES), jnp.float32)],
        ),
        compiler_params=pltpu.CompilerParams(
            dimension_semantics=("arbitrary",),
        ),
        cost_estimate=cost,
    )(*inputs)

    # .sum(-1).mean() == total_sum / N  (pad & overhang masked to exactly 0)
    return out[0, 0] / jnp.float32(N)


if __name__ == "__main__":
    key = jax.random.PRNGKey(0)

    def check(name, N, C, gamma, use_pw, key, block_rows=2048):
        kp, kt, knext = jax.random.split(key, 3)
        preds = jax.random.normal(kp, (N, C), dtype=jnp.float32) * 2.0
        targs = jax.random.bernoulli(kt, p=0.35, shape=(N, C)).astype(jnp.float32)
        pw = jnp.linspace(0.5, 2.0, C, dtype=jnp.float32) if use_pw else None
        loss = binary_focal_bce_loss(preds, targs, pw, gamma=gamma,
                                     block_rows=block_rows, min_pallas_elements=0)
        loss = jax.block_until_ready(loss)
        ref = _reference_loss(preds, targs,
                              None if pw is None else pw.reshape(1, C), gamma)
        assert jnp.allclose(loss, ref, rtol=1e-4, atol=1e-5), (name, loss, ref)
        return knext

    # 1) module defaults: gamma=2, pos_weight set, C a power of two
    key = check("defaults", 16, 16, 2.0, True, key)
    # 2) ragged shapes, C not dividing 128, non-integer gamma (jnp.power path)
    key = check("ragged", 37, 24, 1.5, True, key)
    # 3) multi-block grid + in-kernel tail mask + periodic pos_weight pattern
    key = check("multiblock", 300, 24, 2.0, True, key, block_rows=24)
    # 4) no pos_weight path
    key = check("no_pw", 20, 10, 2.0, False, key)

    print("KERNEL_OK")
</pallas_src>

<mosaic_0001>
module attributes {stable_mosaic.version = 11 : i64} {
  func.func @_focal_bce_kernel(%arg0: i32, %arg1: memref<8x128xf32, #tpu.memory_space<vmem>>, %arg2: memref<8x128xf32, #tpu.memory_space<vmem>>, %arg3: memref<8x128xf32, #tpu.memory_space<vmem>>, %arg4: memref<1x1xf32, #tpu.memory_space<smem>>, %arg5: memref<8x128xf32, #tpu.memory_space<vmem>>) attributes {dimension_semantics = [#tpu.dimension_semantics<arbitrary>], iteration_bounds = array<i64: 1>, scalar_prefetch = 0 : i64, scratch_operands = 1 : i64, tpu.core_type = #tpu.core_type<tc>, window_params = [{transform_indices = @transform_0, window_bounds = array<i64: 8, 128>}, {transform_indices = @transform_1, window_bounds = array<i64: 8, 128>}, {pipeline_mode = #tpu.pipeline_mode<synchronous>, transform_indices = @transform_2, window_bounds = array<i64: 8, 128>}, {transform_indices = @transform_3, window_bounds = array<i64: 1, 1>}]} {
    %c0_i32 = arith.constant 0 : i32
    %0 = arith.cmpi eq, %arg0, %c0_i32 : i32
    %1 = arith.extui %0 : i1 to i32
    %c0_i32_0 = arith.constant 0 : i32
    %2 = arith.cmpi ne, %1, %c0_i32_0 : i32
    scf.if %2 {
      %cst_21 = arith.constant 0.000000e+00 : f32
      %57 = vector.broadcast %cst_21 : f32 to vector<8x128xf32>
      %c0_22 = arith.constant 0 : index
      %c0_23 = arith.constant 0 : index
      %58 = vector.load %arg5[%c0_22, %c0_23] : memref<8x128xf32, #tpu.memory_space<vmem>>, vector<8x128xf32>
      tpu.vector_store %arg5[%c0_22, %c0_23], %57 {strides = array<i32>} : memref<8x128xf32, #tpu.memory_space<vmem>>, vector<8x128xf32>,
    } else {
    }
    %c0 = arith.constant 0 : index
    %c0_1 = arith.constant 0 : index
    %3 = vector.load %arg1[%c0, %c0_1] : memref<8x128xf32, #tpu.memory_space<vmem>>, vector<8x128xf32>
    %c0_2 = arith.constant 0 : index
    %c0_3 = arith.constant 0 : index
    %4 = vector.load %arg2[%c0_2, %c0_3] : memref<8x128xf32, #tpu.memory_space<vmem>>, vector<8x128xf32>
    %5 = math.absf %3 : vector<8x128xf32>
    %cst = arith.constant 0.000000e+00 : f32
    %6 = vector.broadcast %cst : f32 to vector<8x128xf32>
    %7 = arith.subf %6, %5 : vector<8x128xf32>
    %8 = math.exp %7 : vector<8x128xf32>
    %9 = math.log1p %8 : vector<8x128xf32>
    %cst_4 = arith.constant 0.000000e+00 : f32
    %10 = vector.broadcast %cst_4 : f32 to vector<8x128xf32>
    %11 = arith.maximumf %3, %10 : vector<8x128xf32>
    %12 = arith.addf %11, %9 : vector<8x128xf32>
    %13 = arith.subf %12, %3 : vector<8x128xf32>
    %cst_5 = arith.constant 1.000000e+00 : f32
    %14 = vector.broadcast %cst_5 : f32 to vector<8x128xf32>
    %15 = arith.subf %14, %4 : vector<8x128xf32>
    %c0_6 = arith.constant 0 : index
    %c0_7 = arith.constant 0 : index
    %16 = vector.load %arg3[%c0_6, %c0_7] : memref<8x128xf32, #tpu.memory_space<vmem>>, vector<8x128xf32>
    %17 = arith.mulf %16, %4 : vector<8x128xf32>
    %18 = arith.mulf %17, %13 : vector<8x128xf32>
    %19 = arith.mulf %15, %12 : vector<8x128xf32>
    %20 = arith.addf %18, %19 : vector<8x128xf32>
    %cst_8 = arith.constant 0.000000e+00 : f32
    %21 = vector.broadcast %cst_8 : f32 to vector<8x128xf32>
    %22 = arith.cmpf oge, %3, %21 : vector<8x128xf32>
    %cst_9 = arith.constant 1.000000e+00 : f32
    %23 = vector.broadcast %cst_9 : f32 to vector<8x128xf32>
    %24 = arith.select %22, %23, %8 : vector<8x128xi1>, vector<8x128xf32>
    %cst_10 = arith.constant 1.000000e+00 : f32
    %25 = vector.broadcast %cst_10 : f32 to vector<8x128xf32>
    %26 = arith.addf %25, %8 : vector<8x128xf32>
    %27 = tpu.reciprocal %26 : vector<8x128xf32> -> vector<8x128xf32>
    %28 = arith.mulf %24, %27 : vector<8x128xf32>
    %cst_11 = arith.constant 2.000000e+00 : f32
    %29 = vector.broadcast %cst_11 : f32 to vector<8x128xf32>
    %30 = arith.mulf %29, %4 : vector<8x128xf32>
    %cst_12 = arith.constant 1.000000e+00 : f32
    %31 = vector.broadcast %cst_12 : f32 to vector<8x128xf32>
    %32 = arith.subf %31, %30 : vector<8x128xf32>
    %33 = arith.mulf %28, %32 : vector<8x128xf32>
    %34 = arith.addf %4, %33 : vector<8x128xf32>
    %35 = arith.mulf %34, %34 : vector<8x128xf32>
    %36 = arith.mulf %35, %20 : vector<8x128xf32>
    %37 = tpu.iota {dimensions = array<i32: 0>} : vector<8x128xi32>
    %38 = tpu.iota {dimensions = array<i32: 1>} : vector<8x128xi32>
    %c8_i32 = arith.constant 8 : i32
    %39 = arith.muli %arg0, %c8_i32 : i32
    %40 = vector.broadcast %39 : i32 to vector<8x128xi32>
    %41 = arith.addi %40, %37 : vector<8x128xi32>
    %c128_i32 = arith.constant 128 : i32
    %42 = vector.broadcast %c128_i32 : i32 to vector<8x128xi32>
    %43 = arith.muli %41, %42 : vector<8x128xi32>
    %44 = arith.addi %43, %38 : vector<8x128xi32>
    %c256_i32 = arith.constant 256 : i32
    %45 = vector.broadcast %c256_i32 : i32 to vector<8x128xi32>
    %46 = arith.cmpi slt, %44, %45 : vector<8x128xi32>
    %cst_13 = arith.constant 0.000000e+00 : f32
    %47 = vector.broadcast %cst_13 : f32 to vector<8x128xf32>
    %48 = arith.select %46, %36, %47 : vector<8x128xi1>, vector<8x128xf32>
    %c0_14 = arith.constant 0 : index
    %c0_15 = arith.constant 0 : index
    %49 = vector.load %arg5[%c0_14, %c0_15] : memref<8x128xf32, #tpu.memory_space<vmem>>, vector<8x128xf32>
    %50 = vector.shape_cast %48 : vector<8x128xf32> to vector<1x8x128xf32>
    %cst_16 = arith.constant dense<0.000000e+00> : vector<8x128xf32>
    %51 = vector.multi_reduction <add>, %50, %cst_16 [0] : vector<1x8x128xf32> to vector<8x128xf32>
    %52 = arith.addf %49, %51 : vector<8x128xf32>
    %c0_17 = arith.constant 0 : index
    %c0_18 = arith.constant 0 : index
    %53 = vector.load %arg5[%c0_17, %c0_18] : memref<8x128xf32, #tpu.memory_space<vmem>>, vector<8x128xf32>
    tpu.vector_store %arg5[%c0_17, %c0_18], %52 {strides = array<i32>} : memref<8x128xf32, #tpu.memory_space<vmem>>, vector<8x128xf32>,
    %c0_i32_19 = arith.constant 0 : i32
    %54 = arith.cmpi eq, %arg0, %c0_i32_19 : i32
    %55 = arith.extui %54 : i1 to i32
    %c0_i32_20 = arith.constant 0 : i32
    %56 = arith.cmpi ne, %55, %c0_i32_20 : i32
    scf.if %56 {
      %c0_21 = arith.constant 0 : index
      %c0_22 = arith.constant 0 : index
      %57 = vector.load %arg5[%c0_21, %c0_22] : memref<8x128xf32, #tpu.memory_space<vmem>>, vector<8x128xf32>
      %58 = vector.shape_cast %57 : vector<8x128xf32> to vector<1x8x128xf32>
      %cst_23 = arith.constant dense<0.000000e+00> : vector<1xf32>
      %59 = vector.multi_reduction <add>, %58, %cst_23 [1, 2] : vector<1x8x128xf32> to vector<1xf32>
      %60 = vector.shape_cast %59 : vector<1xf32> to vector<1x1x1xf32>
      %61 = vector.extract %60[0, 0, 0] : f32 from vector<1x1x1xf32>
      %c0_24 = arith.constant 0 : index
      %c0_25 = arith.constant 0 : index
      %62 = memref.load %arg4[%c0_24, %c0_25] : memref<1x1xf32, #tpu.memory_space<smem>>
      memref.store %61, %arg4[%c0_24, %c0_25] : memref<1x1xf32, #tpu.memory_space<smem>>
    } else {
    }
    return
  }
  func.func @transform_0(%arg0: i32) -> (i32, i32) {
    %c0_i32 = arith.constant 0 : i32
    %c0_i32_0 = arith.constant 0 : i32
    return %arg0, %c0_i32 : i32, i32
  }
  func.func @transform_1(%arg0: i32) -> (i32, i32) {
    %c0_i32 = arith.constant 0 : i32
    %c0_i32_0 = arith.constant 0 : i32
    return %arg0, %c0_i32 : i32, i32
  }
  func.func @transform_2(%arg0: i32) -> (i32, i32) {
    %c0_i32 = arith.constant 0 : i32
    %c0_i32_0 = arith.constant 0 : i32
    %c0_i32_1 = arith.constant 0 : i32
    return %c0_i32, %c0_i32_0 : i32, i32
  }
  func.func @transform_3(%arg0: i32) -> (i32, i32) {
    %c0_i32 = arith.constant 0 : i32
    %c0_i32_0 = arith.constant 0 : i32
    %c0_i32_1 = arith.constant 0 : i32
    return %c0_i32, %c0_i32_0 : i32, i32
  }
}

</mosaic_0001>

<bundles_post_ra>
// kernel: tpu_custom_call.1
= control target key start
LH: loop header
LB: loop body
LE: loop exit
PB: predicated region body
PF: predicated region fallthrough
CT: control target
= control target key end

     0   :  { %8 = vsyncpa [#allocation4], 0  ;;  %s294_s0 = inlined_call_operand.hbm [shape: f32[8,128], index: 0, kind: input, shape index: {}]   ;;  %s295_s1 = inlined_call_operand.hbm [shape: f32[8,128], index: 1, kind: input, shape index: {}]   ;;  %s296_s2 = inlined_call_operand.hbm [shape: f32[8,128], index: 2, kind: input, shape index: {}]   ;;  %s297_s3 = inlined_call_operand.hbm [shape: f32[1,1], index: 3, kind: output, shape index: {}]  }
   0x1   :  { %9 = vsyncpa [#allocation7], 0  ;;  %s27_s14 = sshll.u32 %s295_s1, 4  ;;  %s28_s14 = int_to_ptr.hbm [resolvable:$true] %s27_s14 }
   0x2   :  { %10 = vsyncpa [#allocation5], 0  ;;  %s258_s15 = smov [#allocation6]   ;;  %s16_s19 = sshll.u32 %s294_s0, 4  ;;  %s17_s19 = int_to_ptr.hbm [resolvable:$true] %s16_s19 }
   0x3   :  { %s29_s16 = sshll.u32 %s258_s15, 4  ;;  %s259_s20 = smov [#allocation3]   ;;  %s30_s16 = int_to_ptr.vmem [resolvable:$true] %s29_s16 }
   0x4   :  { %32 = dma.hbm_to_vmem [thread:$0]  %s28_s14, 128, %s30_s16, [#allocation7]  }
   0x5   :  { %s18_s21 = sshll.u32 %s259_s20, 4  ;;  %s38_s24 = sshll.u32 %s296_s2, 4  ;;  %s19_s21 = int_to_ptr.vmem [resolvable:$true] %s18_s21  ;;  %s39_s24 = int_to_ptr.hbm [resolvable:$true] %s38_s24 }
   0x6   :  { %21 = dma.hbm_to_vmem [thread:$0]  %s17_s19, 128, %s19_s21, [#allocation4]  }
   0x7   :  { %s260_s1 = smov [#allocation8]  }
   0x8   :  { %s40_s25 = sshll.u32 %s260_s1, 4  ;;  %s41_s25 = int_to_ptr.vmem [resolvable:$true] %s40_s25 }
   0x9   :  { %43 = dma.hbm_to_vmem [thread:$0]  %s39_s24, 128, %s41_s25, [#allocation7]  }
   0xa   :  { %252 = dma.done.wait [#allocation4], 128  }
   0xb   :  { %253 = vsyncadd [#allocation4], 4294967168 }
   0xc   :  { %254 = dma.done.wait [#allocation7], 256  }
   0xd   :  { %255 = vsyncadd [#allocation7], 4294967040  ;;  %v61_v0 = vld [vmem:[#allocation3] sm:$0xff]  ;;  %v62_v15 = vld [vmem:[#allocation6] sm:$0xff]  ;;  %v109_v18 = vlaneseq  ;;  %s144_s26 = sshll.u32 %s297_s3, 4  ;;  %s261_s28 = smov [#allocation9]   ;;  %s145_s26 = int_to_ptr.hbm [resolvable:$true] %s144_s26 }
   0xe   :  { %v63_v1 = vand.u32 2147483647, %v61_v0  ;;  %v76_v11 = vmax.f32 %v61_v0, 0.0  ;;  %v80_v22 = vld [vmem:[#allocation8] sm:$0xff]  ;;  %vm85_vm3 = vcmp.ge.f32.partialorder %v61_v0, 0.0  ;;  %v103_v24 = vmul.f32 2.0, %v62_v15 }
   0xf   :  { %v79_v25 = vsub.f32 1.0, %v62_v15  ;;  %v110_v27 = vshrl.u32 %v109_v18, 7  ;;  %v81_v29 = vmul.f32 %v80_v22, %v62_v15  ;;  %v112_v35 = vand.u32 127, %v109_v18 }
  0x10   :  { %v64_v2 = vsub.f32 0.0, %v63_v1  ;;  %v104_v33 = vsub.f32 1.0, %v103_v24 }
  0x11   :  { %v116_v36 = vmul.u32 128, %v110_v27 }
  0x12   :  { %v65_v3 = vmul.f32 1.442695, %v64_v2 }
  0x13   :  { %v117_v41 = vadd.s32 %v116_v36, %v112_v35 }
  0x14   :  { %162 = vpow2.f32 %v65_v3 }
  0x15   :  { %vm118_vm6 = vcmp.lt.s32.totalorder %v117_v41, 256 }
  0x1a   :  { %v163_v4 = vpop.eup %162 }
  0x1b   :  { %v67_v5 = vadd.f32 1.0, %v163_v4  ;;  %v70_v6 = vmul.f32 -0.5, %v163_v4  ;;  %v73_v8 = vand.u32 2147483647, %v163_v4  ;;  %v86_v31 = vsel %vm85_vm3, 1.0, %v163_v4 }
  0x1d   :  { %164 = vlog2.f32 %v67_v5  ;;  %v71_v7 = vadd.f32 1.0, %v70_v6  ;;  %vm74_vm0 = vcmp.lt.f32.partialorder %v73_v8, 0.0004427343  ;;  %vm93_vm1 = vweird.f32 %v67_v5 }
  0x1e   :  { %166 = vrcp.f32 %v67_v5  ;;  %v99_v17 = vand.u32 2147483648, %v67_v5  ;;  %v97_v21 = vand.u32 2147483647, %v67_v5 }
  0x1f   :  { %v72_v9 = vmul.f32 %v163_v4, %v71_v7 }
  0x20   :  { %v100_v26 = vor.u32 1.1754944e-38, %v99_v17  ;;  %vm98_vm5 = vcmp.eq.f32.partialorder %v97_v21, 8.507059e+37 }
  0x23   :  { %v165_v10 = vpop.eup %164 }
  0x24   :  { %v167_v12 = vpop.eup %166  ;;  %v69_v13 = vmul.f32 0.6931472, %v165_v10 }
  0x25   :  { %v89_v14 = vmul.f32 %v167_v12, %v67_v5  ;;  %vm94_vm2 = vweird.f32 %v167_v12 }
  0x26   :  { %v75_v16 = vsel %vm74_vm0, %v72_v9, %v69_v13  ;;  %vm95_vm4 = vmor %vm93_vm1, %vm94_vm2 }
  0x27   :  { %v77_v19 = vadd.f32 %v76_v11, %v75_v16  ;;  %v90_v20 = vsub.f32 1.0, %v89_v14 }
  0x29   :  { %v91_v23 = vmul.f32 %v167_v12, %v90_v20  ;;  %v78_v28 = vsub.f32 %v77_v19, %v61_v0  ;;  %v83_v38 = vmul.f32 %v79_v25, %v77_v19 }
  0x2b   :  { %v92_v30 = vadd.f32 %v167_v12, %v91_v23  ;;  %v82_v37 = vmul.f32 %v81_v29, %v78_v28 }
  0x2d   :  { %v96_v32 = vsel %vm95_vm4, %v167_v12, %v92_v30  ;;  %v84_v42 = vadd.f32 %v83_v38, %v82_v37 }
  0x2e   :  { %v101_v34 = vsel %vm98_vm5, %v100_v26, %v96_v32 }
  0x2f   :  { %v102_v39 = vmul.f32 %v101_v34, %v86_v31 }
  0x31   :  { %v105_v40 = vmul.f32 %v104_v33, %v102_v39 }
  0x33   :  { %v106_v43 = vadd.f32 %v105_v40, %v62_v15 }
  0x35   :  { %v107_v44 = vmul.f32 %v106_v43, %v106_v43 }
  0x37   :  { %v108_v45 = vmul.f32 %v107_v44, %v84_v42 }
  0x39   :  { %v119_v46 = vsel %vm118_vm6, %v108_v45, 0.0 }
  0x3a   :  { %128 = vadd.xlane.f32.xlu0 %v119_v46 }
  0xad   :  { %v129_v47 = vpop.xlane.xlu0 %128 }
  0xae   :  { %v130_v48 = vrot.slane %v129_v47, 4 }
  0xb0   :  { %v131_v49 = vadd.f32 %v130_v48, %v129_v47 }
  0xb2   :  { %v132_v50 = vrot.slane %v131_v49, 2 }
  0xb4   :  { %v133_v51 = vadd.f32 %v132_v50, %v131_v49 }
  0xb6   :  { %v134_v52 = vrot.slane %v133_v51, 1 }
  0xb8   :  { %v135_v53 = vadd.f32 %v134_v52, %v133_v51 }
  0xba   :  { %156 = vpush %v135_v53 }
  0xeb   :  { %s157_s27 = spop %156 }
  0xec   :  { %138 = sst [smem:[#allocation9]] %s157_s27 }
  0xed   :  { %147 = dma.smem_to_hbm %s261_s28, 16, %s145_s26, [#allocation5]  }
  0xee   :  { %256 = dma.done.wait [#allocation5], 16  }
  0xef   :  { %257 = vsyncadd [#allocation5], 4294967280 }
  0xf0   :  { %152 = sfence }
  0xf1   :  { %153 = vsyncpa [#allocation4], 1 }
  0xf2   :  { %154 = vsyncpa [#allocation7], 1 }
  0xf3   :  { %155 = vsyncpa [#allocation5], 1 }

</bundles_post_ra>
